<compile_context>
chip_gen: v6e
topology: v6e:2x2x1
jax: 0.10.0
libtpu: 0.0.40
codegen_flags: <defaults>
</compile_context>

<pallas_src>
import jax
import jax.numpy as jnp
from jax.experimental import pallas as pl
from jax.experimental.pallas import tpu as pltpu


# -----------------------------------------------------------------------------
# __init__-equivalent: build the constant `pix` ray field [H, W, 3]
# -----------------------------------------------------------------------------
def build_pix(height, width, IK, rdistor=None, tdistor=None):
    H, W = height, width
    v = jnp.linspace(0.0, 1.0, H, dtype=jnp.float32)
    u = jnp.linspace(0.0, 1.0, W, dtype=jnp.float32)
    vv, uu = jnp.meshgrid(v, u, indexing="ij")          # torch.meshgrid(v, u, 'ij')
    ones = jnp.ones_like(uu)
    uv = jnp.stack([uu, vv, ones], axis=-1)             # [H, W, 3]

    f = jnp.array([1.0 - 1.0 / W, 1.0 - 1.0 / H, 1.0], dtype=jnp.float32)  # [3]

    IK3 = IK[0].astype(jnp.float32)                     # [3, 3]
    pix = jnp.einsum("ij,hwj->hwi", IK3, uv)            # (IK[:3,:3] @ uv) -> [H, W, 3]
    pix = pix * f                                       # broadcast over channels

    x = pix[:, :, 0:1]
    y = pix[:, :, 1:2]
    r2 = x * x + y * y
    kr = 1.0
    if rdistor is not None:
        k1, k2, k3 = rdistor
        r4 = r2 * r2
        r6 = r4 * r2
        kr = kr + k1 * r2 + k2 * r4 + k3 * r6
    kdx, kdy = 0.0, 0.0
    if tdistor is not None:
        p1, p2 = tdistor
        kdx = 2 * p1 * x * y + p2 * (r2 + 2 * x * x)
        kdy = p1 * (r2 + 2 * y * y) + 2 * p2 * x * y
    pix = jnp.concatenate([x * kr + kdx, y * kr + kdy, pix[:, :, 2:3]], axis=-1)
    return pix                                          # [H, W, 3]


# -----------------------------------------------------------------------------
# Tile-size selection (trace-time, pure Python).
# -----------------------------------------------------------------------------
_MAX_LANE_TILE = 8192            # elements along the flattened spatial axis
_TARGET_OUT_BYTES = 2 << 20      # ~2 MiB of output per grid step


def _largest_lane_tile(HW):
    """Largest multiple-of-128 divisor of HW (capped), else full extent."""
    if HW % 128 != 0:
        return HW                               # full-extent block is always legal
    t = min(_MAX_LANE_TILE, HW)
    t -= t % 128
    while t >= 128:
        if HW % t == 0:
            return t
        t -= 128
    return HW


def _choose_tiles(BN, HW, out_itemsize):
    T = _largest_lane_tile(HW)
    bytes_per_frame_row = 4 * T * out_itemsize   # 4 channels of one frame's tile
    f_target = max(1, _TARGET_OUT_BYTES // bytes_per_frame_row)
    if f_target >= BN:
        return BN, T
    f = 1
    for cand in range(int(f_target), 0, -1):     # largest divisor of BN <= target
        if BN % cand == 0:
            f = cand
            break
    return f, T


# -----------------------------------------------------------------------------
# Pallas kernel: pc[f, c, t] = depth[f, t] * pix[c, t] (c<3);  pc[f, 3, t] = 1
# -----------------------------------------------------------------------------
def _backproj_kernel(d_ref, pix_ref, o_ref):
    d = d_ref[...]                                   # (F, 1, T)  f32
    p = pix_ref[...]                                 # (3, T)     f32
    xyz = d * p[None, :, :]                          # (F, 3, T)  broadcast multiply
    o_ref[:, 0:3, :] = xyz.astype(o_ref.dtype)       # direct slice store, no concat
    o_ref[:, 3:4, :] = jnp.ones(d.shape, o_ref.dtype)  # constant use_mono channel


def depth_backproj_d(depth, pix_hw3, use_mono=True, dim=-3, out_dtype=jnp.float32):
    """depth: [B, N, H, W]; pix_hw3: [H, W, 3]. Returns [B, N, 4, H, W]."""
    assert use_mono and dim in (-3, 2), "kernel implements the default path"
    B, N, H, W = depth.shape
    assert pix_hw3.shape == (H, W, 3)
    # TODO(synk): F.interpolate(bilinear) resize path not implemented; inputs
    #             are assumed to already match (H, W) as in the common case.

    BN, HW = B * N, H * W
    out_itemsize = jnp.dtype(out_dtype).itemsize

    # Lane-dense flattened layouts.
    d3 = depth.reshape(BN, 1, HW).astype(jnp.float32)                       # (BN, 1, HW)
    pix_flat = jnp.transpose(pix_hw3, (2, 0, 1)).reshape(3, HW)             # (3, HW)
    pix_flat = pix_flat.astype(jnp.float32)

    F_blk, T_blk = _choose_tiles(BN, HW, out_itemsize)
    n_sp = HW // T_blk
    n_fr = BN // F_blk

    bytes_accessed = (BN * HW * 4            # depth read (f32)
                      + 3 * HW * 4           # rays read once (spatial axis is outer)
                      + BN * 4 * HW * out_itemsize)  # output write

    out = pl.pallas_call(
        _backproj_kernel,
        out_shape=jax.ShapeDtypeStruct((BN, 4, HW), out_dtype),
        grid_spec=pltpu.PrefetchScalarGridSpec(
            num_scalar_prefetch=0,
            # spatial axis OUTER, frame axis INNER -> pix block re-fetched only
            # when the spatial tile changes.
            grid=(n_sp, n_fr),
            in_specs=[
                pl.BlockSpec((F_blk, 1, T_blk), lambda j, i: (i, 0, j)),   # depth
                pl.BlockSpec((3, T_blk), lambda j, i: (0, j)),             # rays
            ],
            out_specs=pl.BlockSpec((F_blk, 4, T_blk), lambda j, i: (i, 0, j)),
        ),
        compiler_params=pltpu.CompilerParams(
            dimension_semantics=("parallel", "parallel")),
        cost_estimate=pl.CostEstimate(
            flops=3 * BN * HW,
            transcendentals=0,
            bytes_accessed=bytes_accessed),
    )(d3, pix_flat)

    return out.reshape(B, N, 4, H, W)


# -----------------------------------------------------------------------------
# Pure-JAX reference (mirrors the PyTorch forward) for a correctness check.
# -----------------------------------------------------------------------------
def depth_backproj_ref(depth, pix_hw3):
    pc = depth[..., None] * pix_hw3                       # [B, N, H, W, 3]
    ones = jnp.ones_like(depth)[..., None]                # [B, N, H, W, 1]
    pc = jnp.concatenate([pc, ones], axis=-1)             # [B, N, H, W, 4]
    return jnp.transpose(pc, (0, 1, 4, 2, 3))             # [B, N, 4, H, W]


if __name__ == "__main__":
    B, N, H, W = 2, 2, 16, 16

    # Deterministic normalized inverse-intrinsics (IK has shape [1, 3, 3]).
    K = jnp.array([[0.8, 0.0, 0.5],
                   [0.0, 0.9, 0.5],
                   [0.0, 0.0, 1.0]], dtype=jnp.float32)
    IK = jnp.linalg.inv(K)[None]                           # [1, 3, 3]

    pix = build_pix(H, W, IK, rdistor=None, tdistor=None)  # [H, W, 3]

    key = jax.random.PRNGKey(0)
    depth = jax.random.uniform(key, (B, N, H, W), dtype=jnp.float32,
                               minval=0.1, maxval=10.0)

    pc = depth_backproj_d(depth, pix)
    pc = jax.block_until_ready(pc)

    ref = depth_backproj_ref(depth, pix)
    assert pc.shape == (B, N, 4, H, W)
    assert jnp.allclose(pc, ref, atol=1e-6, rtol=1e-6), "mismatch vs reference"

    print("KERNEL_OK")
</pallas_src>

<mosaic_0001>
module attributes {stable_mosaic.version = 11 : i64} {
  func.func @_backproj_kernel(%arg0: i32, %arg1: i32, %arg2: memref<4x1x256xf32, #tpu.memory_space<vmem>>, %arg3: memref<3x256xf32, #tpu.memory_space<vmem>>, %arg4: memref<4x4x256xf32, #tpu.memory_space<vmem>>) attributes {dimension_semantics = [#tpu.dimension_semantics<parallel>, #tpu.dimension_semantics<parallel>], iteration_bounds = array<i64: 1, 1>, scalar_prefetch = 0 : i64, scratch_operands = 0 : i64, tpu.core_type = #tpu.core_type<tc>, window_params = [{transform_indices = @transform_0, window_bounds = array<i64: 4, 1, 256>}, {transform_indices = @transform_1, window_bounds = array<i64: 3, 256>}, {transform_indices = @transform_2, window_bounds = array<i64: 4, 4, 256>}]} {
    %c0 = arith.constant 0 : index
    %c0_0 = arith.constant 0 : index
    %c0_1 = arith.constant 0 : index
    %0 = vector.load %arg2[%c0, %c0_0, %c0_1] : memref<4x1x256xf32, #tpu.memory_space<vmem>>, vector<4x1x256xf32>
    %c0_2 = arith.constant 0 : index
    %c0_3 = arith.constant 0 : index
    %1 = vector.load %arg3[%c0_2, %c0_3] : memref<3x256xf32, #tpu.memory_space<vmem>>, vector<3x256xf32>
    %2 = vector.shape_cast %1 : vector<3x256xf32> to vector<1x3x256xf32>
    %3 = vector.broadcast %0 : vector<4x1x256xf32> to vector<4x3x256xf32>
    %4 = vector.broadcast %2 : vector<1x3x256xf32> to vector<4x3x256xf32>
    %5 = arith.mulf %3, %4 : vector<4x3x256xf32>
    %c0_4 = arith.constant 0 : index
    %c0_5 = arith.constant 0 : index
    %c0_6 = arith.constant 0 : index
    %6 = vector.load %arg4[%c0_4, %c0_5, %c0_6] : memref<4x4x256xf32, #tpu.memory_space<vmem>>, vector<4x3x256xf32>
    tpu.vector_store %arg4[%c0_4, %c0_5, %c0_6], %5 {strides = array<i32>} : memref<4x4x256xf32, #tpu.memory_space<vmem>>, vector<4x3x256xf32>,
    %cst = arith.constant 1.000000e+00 : f32
    %7 = vector.broadcast %cst : f32 to vector<4x1x256xf32>
    %c0_7 = arith.constant 0 : index
    %c3 = arith.constant 3 : index
    %c0_8 = arith.constant 0 : index
    %8 = vector.load %arg4[%c0_7, %c3, %c0_8] : memref<4x4x256xf32, #tpu.memory_space<vmem>>, vector<4x1x256xf32>
    tpu.vector_store %arg4[%c0_7, %c3, %c0_8], %7 {strides = array<i32>} : memref<4x4x256xf32, #tpu.memory_space<vmem>>, vector<4x1x256xf32>,
    return
  }
  func.func @transform_0(%arg0: i32, %arg1: i32) -> (i32, i32, i32) {
    %c0_i32 = arith.constant 0 : i32
    %c0_i32_0 = arith.constant 0 : i32
    return %arg1, %c0_i32, %arg0 : i32, i32, i32
  }
  func.func @transform_1(%arg0: i32, %arg1: i32) -> (i32, i32) {
    %c0_i32 = arith.constant 0 : i32
    %c0_i32_0 = arith.constant 0 : i32
    return %c0_i32, %arg0 : i32, i32
  }
  func.func @transform_2(%arg0: i32, %arg1: i32) -> (i32, i32, i32) {
    %c0_i32 = arith.constant 0 : i32
    %c0_i32_0 = arith.constant 0 : i32
    return %arg1, %c0_i32, %arg0 : i32, i32, i32
  }
}

</mosaic_0001>

<bundles_post_ra>
// kernel: tpu_custom_call.1
= control target key start
LH: loop header
LB: loop body
LE: loop exit
PB: predicated region body
PF: predicated region fallthrough
CT: control target
= control target key end

     0   :  { %7 = vsyncpa [#allocation3], 0  ;;  %s255_s0 = inlined_call_operand.hbm [shape: f32[4,1,256], index: 0, kind: input, shape index: {}]   ;;  %s256_s1 = inlined_call_operand.hbm [shape: f32[3,256], index: 1, kind: input, shape index: {}]   ;;  %s257_s2 = inlined_call_operand.hbm [shape: f32[4,4,256], index: 2, kind: output, shape index: {}]  }
   0x1   :  { %8 = vsyncpa [#allocation6], 0 }
   0x2   :  { %9 = vsyncpa [#allocation4], 0  ;;  %s223_s9 = smov [#allocation2]  }
   0x3   :  { %s15_s10 = sshll.u32 %s223_s9, 4  ;;  %s16_s10 = int_to_ptr.vmem [resolvable:$true] %s15_s10 }
   0x4   :  { %s165_s11 = scalar_lea.vmem %s16_s10, 128  ;;  %p170_p1 = scmp.lt.s32.totalorder %s16_s10, %s16_s10 }
   0x5   :  { %p166_p0 = scmp.ne.s32.totalorder %s16_s10, %s165_s11  ;;  %p171_p2 = scmp.lt.s32.totalorder %s165_s11, %s165_s11 }
   0x7   :  { %p172_p3 = por %p171_p2, %p170_p1 }
   0x9   :  { %p173_p4 = pnand %p172_p3, %p166_p0 }
   0xb   :  { %176 = shalt.err (!%p173_p4)
}
   0xc   :  { %s224_s12 = smov 32   ;;  %s225_s13 = smov 2  }
   0xd   :  { %21 = dma.hbm_to_vmem [thread:$0]  %s255_s0, 128, %s16_s10, [#allocation3], %s224_s12, %s224_s12, %s225_s13  }
   0xe   :  { %s226_s16 = smov [#allocation5]  }
   0xf   :  { %s28_s17 = sshll.u32 %s226_s16, 4  ;;  %s29_s17 = int_to_ptr.vmem [resolvable:$true] %s28_s17 }
  0x10   :  { %s185_s18 = scalar_lea.vmem %s29_s17, 128  ;;  %p190_p6 = scmp.lt.s32.totalorder %s29_s17, %s29_s17 }
  0x11   :  { %p186_p5 = scmp.ne.s32.totalorder %s29_s17, %s185_s18  ;;  %p191_p7 = scmp.lt.s32.totalorder %s185_s18, %s185_s18 }
  0x13   :  { %p192_p8 = por %p191_p7, %p190_p6 }
  0x15   :  { %p193_p9 = pnand %p192_p8, %p186_p5 }
  0x17   :  { %196 = shalt.err (!%p193_p9)
}
  0x18   :  { %31 = dma.hbm_to_vmem [thread:$0]  %s256_s1, 128, %s29_s17, [#allocation6]  }
  0x19   :  { %217 = dma.done.wait [#allocation3], 128  }
  0x1a   :  { %218 = vsyncadd [#allocation3], 4294967168 }
  0x1b   :  { %219 = dma.done.wait [#allocation6], 128  }
  0x1c   :  { %220 = vsyncadd [#allocation6], 4294967168  ;;  %v47_v0 = vlaneseq  ;;  %v227_v2 = vmov 1.0   ;;  %v38_v5 = vld [vmem:[#allocation2] sm:$0x3]  ;;  %s228_s0 = smov [#allocation7]  }
  0x1d   :  { %v42_v6 = vld [vmem:[#allocation5] sm:$0x77]  ;;  %v39_v7 = vld [vmem:[#allocation2 + $0x2] sm:$0x3]  ;;  %v40_v12 = vld [vmem:[#allocation2 + $0x4] sm:$0x3] }
  0x1e   :  { %v48_v1 = vshrl.u32 %v47_v0, 7  ;;  %vm120_vm0 = vcmp.lt.s32.totalorder %v47_v0, 256  ;;  %v88_v10 = vcombine.high %v42_v6, %v42_v6  ;;  %v41_v13 = vld [vmem:[#allocation2 + $0x6] sm:$0x3]  ;;  %s135_s1 = sshll.u32 %s228_s0, 4  ;;  %s136_s1 = int_to_ptr.vmem [resolvable:$true] %s135_s1 }
  0x1f   :  { %123 = vst.msk [vmem:[#allocation7 + $0x3] ss:$4 sm:$0x3] %vm120_vm0, %v227_v2  ;;  %125 = vst.msk [vmem:[#allocation7 + $0xb] ss:$4 sm:$0x3] %vm120_vm0, %v227_v2  ;;  %p202_p11 = scmp.lt.s32.totalorder %s136_s1, %s136_s1 }
  0x20   :  { %127 = vst.msk [vmem:[#allocation7 + $0x13] ss:$4 sm:$0x3] %vm120_vm0, %v227_v2  ;;  %129 = vst.msk [vmem:[#allocation7 + $0x1b] ss:$4 sm:$0x3] %vm120_vm0, %v227_v2 }
  0x21   :  { %v49_v3 = vsub.s32 0, %v48_v1  ;;  %v53_v4 = vsub.s32 1, %v48_v1  ;;  %s197_s21 = scalar_lea.vmem %s136_s1, 512 }
  0x22   :  { %p198_p10 = scmp.ne.s32.totalorder %s136_s1, %s197_s21  ;;  %p203_p12 = scmp.lt.s32.totalorder %s197_s21, %s197_s21 }
  0x23   :  { %v50_v8 = vrot.slane %v38_v5, %v49_v3  ;;  %v54_v9 = vrot.slane %v38_v5, %v53_v4  ;;  %v58_v11 = vrot.slane %v39_v7, %v49_v3  ;;  %v62_v14 = vrot.slane %v39_v7, %v53_v4 }
  0x24   :  { %v66_v15 = vrot.slane %v40_v12, %v49_v3  ;;  %v70_v16 = vrot.slane %v40_v12, %v53_v4  ;;  %v74_v17 = vrot.slane %v41_v13, %v49_v3  ;;  %v78_v21 = vrot.slane %v41_v13, %v53_v4  ;;  %p204_p13 = por %p203_p12, %p202_p11 }
  0x25   :  { %v90_v18 = vmul.f32 %v50_v8, %v42_v6  ;;  %v91_v19 = vmul.f32 %v88_v10, %v54_v9  ;;  %v92_v20 = vmul.f32 %v58_v11, %v42_v6  ;;  %v93_v22 = vmul.f32 %v88_v10, %v62_v14 }
  0x26   :  { %v94_v23 = vmul.f32 %v66_v15, %v42_v6  ;;  %v95_v24 = vmul.f32 %v88_v10, %v70_v16  ;;  %v96_v25 = vmul.f32 %v74_v17, %v42_v6  ;;  %v97_v27 = vmul.f32 %v88_v10, %v78_v21  ;;  %p205_p0 = pnand %p204_p13, %p198_p10 }
  0x27   :  { %v106_v26 = vcombine.low %v90_v18, %v91_v19  ;;  %v107_v28 = vcombine.low %v92_v20, %v93_v22 }
  0x28   :  { %v108_v29 = vcombine.low %v94_v23, %v95_v24  ;;  %v109_v30 = vcombine.low %v96_v25, %v97_v27 }
  0x29   :  { %114 = vst [vmem:[#allocation7] sm:$0x77] %v106_v26  ;;  %115 = vst [vmem:[#allocation7 + $0x8] sm:$0x77] %v107_v28 }
  0x2a   :  { %116 = vst [vmem:[#allocation7 + $0x10] sm:$0x77] %v108_v29  ;;  %117 = vst [vmem:[#allocation7 + $0x18] sm:$0x77] %v109_v30 }
  0x2b   :  { %208 = shalt.err (!%p205_p0)
}
  0x2c   :  { %s229_s22 = smov 128   ;;  %s230_s23 = smov 8  }
  0x2d   :  { %141 = dma.vmem_to_hbm [thread:$0]  %s136_s1, 512, %s257_s2, [#allocation4], %s229_s22, %s229_s22, %s230_s23  }
  0x2e   :  { %221 = dma.done.wait [#allocation4], 512  }
  0x2f   :  { %222 = vsyncadd [#allocation4], 4294966784 }
  0x30   :  { %145 = vsyncpa [#allocation3], 1 }
  0x31   :  { %146 = vsyncpa [#allocation6], 1 }
  0x32   :  { %147 = vsyncpa [#allocation4], 1 }

</bundles_post_ra>
